<compile_context>
chip_gen: v7x
topology: tpu7x:2x2x1
jax: 0.10.0
libtpu: 0.0.40
codegen_flags: <defaults>
</compile_context>

<pallas_src>
import functools
import math

import jax
import jax.numpy as jnp
from jax.experimental import pallas as pl
from jax.experimental.pallas import tpu as pltpu


def _gmm_loss_kernel(*refs, dim, K, coeff_mode):
    """One lane-tile of examples; coeff_mode in {'none', 'smem', 'vmem'}."""
    if coeff_mode == "none":
        target_ref, mean_ref, chol_ref, out_ref, d_scr, q_scr = refs
        coeff_ref = None
    else:
        target_ref, mean_ref, chol_ref, coeff_ref, out_ref, d_scr, q_scr = refs

    T = out_ref.shape[-1]
    KD = K * dim
    half_log2pi = 0.5 * dim * math.log(2.0 * math.pi)

    # d[j*K + k, :] = mean_k[j] - target[j]   (feature-major, component-minor rows)
    for j in range(dim):
        d_scr[j * K:(j + 1) * K, :] = (
            mean_ref[j * K:(j + 1) * K, :] - target_ref[j:j + 1, :])

    # Band 0 of the band-major chol packing holds the raw (log-scaled) diagonals of all
    # K components contiguously -> one batched EUP exp over a (K*dim, T) slab.
    raw_diag = chol_ref[0:KD, :]
    q_scr[...] = jnp.exp(raw_diag) * d_scr[...]          # diagonal contribution to q = L^T d

    # Sub-diagonal bands: contiguous, shifted slabs (full-width VPU ops).
    #   q_k[i] += L_k[i+s, i] * d_k[i+s]  <=>  q[0:(dim-s)*K] += band_s * d[s*K : dim*K]
    off = KD
    for s in range(1, dim):
        rows = (dim - s) * K
        q_scr[0:rows, :] = (
            q_scr[0:rows, :]
            + chol_ref[off:off + rows, :] * d_scr[s * K:s * K + rows, :])
        off += rows

    q = q_scr[...]
    # Row (i*K + k) of m sums over i to 0.5*U_k - trace_k for component k.
    m = 0.5 * (q * q) - raw_diag                         # (K*dim, T)

    if coeff_mode == "none":
        # K == 1 (reference ignores coeff) or implicit unit mixture weights.
        out_ref[...] = jnp.sum(m, axis=0, keepdims=True) + half_log2pi * K
        return

    if coeff_mode == "smem":
        # Constant-across-examples coeff: splat each SMEM scalar onto the lanes.
        ck = jnp.concatenate(
            [jnp.full((1, T), coeff_ref[k], jnp.float32) for k in range(K)], axis=0)
    else:  # "vmem": per-example coeff streamed as a (K, T) block
        ck = coeff_ref[...]
    cexp = jnp.concatenate([ck] * dim, axis=0)           # (K*dim, T), i-major / k-minor
    weighted = jnp.sum(cexp * m, axis=0, keepdims=True)  # sum_k coeff_k*(0.5*U_k - trace_k)
    coeff_sum = jnp.sum(ck, axis=0, keepdims=True)
    out_ref[...] = weighted + half_log2pi * coeff_sum


def _round_up(x, m):
    return ((x + m - 1) // m) * m


def gaussian_mixture_loss(target, mean, chol, coeff=None, aggr=None, tile_n=32768):
    """JAX wrapper reproducing GaussianMixtureLoss.forward semantics."""
    target = jnp.asarray(target, jnp.float32)
    mean = jnp.asarray(mean, jnp.float32)
    chol = jnp.asarray(chol, jnp.float32)

    N, dim = target.shape
    P = dim * (dim + 1) // 2
    if mean.ndim == 2:
        mean = mean[:, None, :]
    if chol.ndim == 2:
        chol = chol[:, None, :]
    K = mean.shape[1]
    assert mean.shape == (N, K, dim), (mean.shape, (N, K, dim))
    assert chol.shape == (N, K, P), (chol.shape, (N, K, P))

    # --- coeff handling: never stream from HBM unless it is genuinely per-example. ---
    if coeff is None or K == 1:
        coeff_mode, coeff_arr = "none", None             # reference K==1 path ignores coeff
    else:
        coeff_arr = jnp.asarray(coeff, jnp.float32)
        if coeff_arr.ndim == 1:
            assert coeff_arr.shape == (K,), f"coeff shape {coeff_arr.shape} != ({K},)"
            coeff_mode = "smem"                          # constant across N -> lives in SMEM
        else:
            assert coeff_arr.shape == (N, K), f"coeff shape {coeff_arr.shape} != ({N},{K})"
            coeff_mode = "vmem"                          # per-example -> streamed (K, tile)

    # --- Lane-dense layout (feature rows, examples on lanes). Pure layout plumbing; a
    # producer would emit this layout directly. ---
    target_t = target.T                                          # (dim, N)
    mean_t = jnp.transpose(mean, (2, 1, 0)).reshape(dim * K, N)  # row j*K+k = mean[:,k,j]

    band_perm = []                                               # band-major order of the P tri-indices
    for s in range(dim):
        for i in range(dim - s):
            j = i + s
            band_perm.append(j * (j + 1) // 2 + i)
    chol_pkn = jnp.transpose(chol, (2, 1, 0))                    # (P, K, N)
    chol_t = jnp.take(chol_pkn, jnp.asarray(band_perm), axis=0).reshape(P * K, N)

    lane_inputs = [target_t, mean_t, chol_t]
    if coeff_mode == "vmem":
        lane_inputs.append(coeff_arr.T)                          # (K, N)

    # Pad examples only to the 128-lane quantum; ragged last grid blocks are handled by
    # Pallas (OOB reads unspecified, OOB writes masked) and discarded by the [:N] slice.
    n_pad = _round_up(max(N, 1), 128)
    pad = n_pad - N
    if pad:
        lane_inputs = [jnp.pad(x, ((0, 0), (0, pad))) for x in lane_inputs]

    # Tile size: large enough to amortize the ~0.35us/step grid overhead, small enough to
    # stay inside scoped VMEM, capped so the grid keeps >= 2 steps (v7x megacore shards
    # the 'parallel' axis across its 2 TensorCores).
    rows_stream = dim + K * dim + K * P + (K if coeff_mode == "vmem" else 0)
    bytes_per_col = 4 * (2 * rows_stream + 2 * 1 + 2 * K * dim)  # 2x-buffered in/out + scratch
    vmem_budget = 24 * 1024 * 1024
    cap_vmem = max(128, (vmem_budget // bytes_per_col) // 128 * 128)
    two_steps = _round_up(pl.cdiv(n_pad, 2), 128)
    tile = max(128, min(int(tile_n), cap_vmem, two_steps, n_pad))
    grid = (pl.cdiv(n_pad, tile),)

    in_specs = [
        pl.BlockSpec((dim, tile), lambda i: (0, i)),
        pl.BlockSpec((dim * K, tile), lambda i: (0, i)),
        pl.BlockSpec((P * K, tile), lambda i: (0, i)),
    ]
    inputs = list(lane_inputs)
    if coeff_mode == "vmem":
        in_specs.append(pl.BlockSpec((K, tile), lambda i: (0, i)))
    elif coeff_mode == "smem":
        in_specs.append(pl.BlockSpec(memory_space=pltpu.MemorySpace.SMEM))
        inputs.append(coeff_arr)                                 # (K,) resident in SMEM

    kernel = functools.partial(_gmm_loss_kernel, dim=dim, K=K, coeff_mode=coeff_mode)

    bytes_per_ex = 4 * (rows_stream + 1)
    cost = pl.CostEstimate(
        flops=N * K * (dim * dim + 5 * dim + 4),
        transcendentals=N * K * dim,
        bytes_accessed=N * bytes_per_ex,
    )

    weighted = pl.pallas_call(
        kernel,
        out_shape=jax.ShapeDtypeStruct((1, n_pad), jnp.float32),
        grid=grid,
        in_specs=in_specs,
        out_specs=pl.BlockSpec((1, tile), lambda i: (0, i)),
        scratch_shapes=[pltpu.VMEM((K * dim, tile), jnp.float32),   # d = mean - target
                        pltpu.VMEM((K * dim, tile), jnp.float32)],  # q = L^T d
        compiler_params=pltpu.CompilerParams(
            dimension_semantics=("parallel",),       # shard grid across TCs on v7x
            vmem_limit_bytes=32 * 1024 * 1024,
        ),
        cost_estimate=cost,
    )(*inputs)

    losses = weighted[0, :N]                                     # (N,)

    # NOTE: the PyTorch K>1 branch applies exp(-x) then -log(x) in float64 around the
    # already-weighted sum — a mathematical identity that we drop rather than emulate.
    if aggr == 'sum':
        return losses.sum()
    if aggr == 'mean':
        return losses.mean()
    return losses


def _reference_loss(target, mean, chol, coeff, aggr=None):
    """Pure-JAX mirror of the PyTorch code, for a sanity check."""
    N, dim = target.shape
    K = mean.shape[1]
    tril_r, tril_c = jnp.tril_indices(dim)

    def gauss(t, m, c):
        L = jnp.zeros((dim, dim), jnp.float32).at[tril_r, tril_c].set(c)
        trace = jnp.trace(L)
        L = L.at[jnp.arange(dim), jnp.arange(dim)].set(jnp.exp(jnp.diag(L)))
        d = m - t
        q = L.T @ d
        return 0.5 * (q @ q + dim * jnp.log(2.0 * jnp.pi)) - trace

    losses = jax.vmap(
        lambda t, ms, cs: jax.vmap(lambda m, c: gauss(t, m, c))(ms, cs)
    )(target, mean, chol)                                  # (N, K)
    if K == 1:
        weighted = losses[:, 0]
    else:
        weighted = jnp.sum(losses * coeff, axis=-1)        # (N,)
    if aggr == 'sum':
        return weighted.sum()
    if aggr == 'mean':
        return weighted.mean()
    return weighted


if __name__ == "__main__":
    key = jax.random.PRNGKey(0)

    # Case 1: mixture (K=3) with per-example coeff (streamed-coeff path).
    N, dim, K = 8, 4, 3
    P = dim * (dim + 1) // 2
    k1, k2, k3, k4 = jax.random.split(key, 4)
    target = jax.random.normal(k1, (N, dim), jnp.float32)
    mean = jax.random.normal(k2, (N, K, dim), jnp.float32)
    chol = 0.5 * jax.random.normal(k3, (N, K, P), jnp.float32)
    coeff = jax.nn.softmax(jax.random.normal(k4, (N, K), jnp.float32), axis=-1)

    out = jax.block_until_ready(gaussian_mixture_loss(target, mean, chol, coeff, aggr=None))
    ref = _reference_loss(target, mean, chol, coeff, aggr=None)
    assert out.shape == (N,)
    assert jnp.allclose(out, ref, rtol=1e-4, atol=1e-4), (out, ref)

    # Case 2: single component (K == 1) with aggregation; coeff ignored as in the reference.
    out1 = jax.block_until_ready(
        gaussian_mixture_loss(target, mean[:, :1], chol[:, :1], None, aggr='mean'))
    ref1 = _reference_loss(target, mean[:, :1], chol[:, :1], jnp.ones((N, 1)), aggr='mean')
    assert jnp.allclose(out1, ref1, rtol=1e-4, atol=1e-4), (out1, ref1)

    # Case 3: K=2 with constant mixture weights (SMEM coeff path); N chosen so the grid
    # has 2 steps and the last block is ragged.
    N2, K2 = 300, 2
    k5, k6, k7, k8 = jax.random.split(jax.random.PRNGKey(1), 4)
    target2 = jax.random.normal(k5, (N2, dim), jnp.float32)
    mean2 = jax.random.normal(k6, (N2, K2, dim), jnp.float32)
    chol2 = 0.5 * jax.random.normal(k7, (N2, K2, P), jnp.float32)
    coeff2 = jax.nn.softmax(jax.random.normal(k8, (K2,), jnp.float32))

    out2 = jax.block_until_ready(
        gaussian_mixture_loss(target2, mean2, chol2, coeff2, aggr='sum'))
    ref2 = _reference_loss(target2, mean2, chol2,
                           jnp.broadcast_to(coeff2, (N2, K2)), aggr='sum')
    assert jnp.allclose(out2, ref2, rtol=1e-3, atol=1e-2), (out2, ref2)

    print("KERNEL_OK")
</pallas_src>

<mosaic_0001>
module attributes {stable_mosaic.version = 11 : i64} {
  func.func @_gmm_loss_kernel(%arg0: i32, %arg1: memref<4x128xf32, #tpu.memory_space<vmem>>, %arg2: memref<12x128xf32, #tpu.memory_space<vmem>>, %arg3: memref<30x128xf32, #tpu.memory_space<vmem>>, %arg4: memref<3x128xf32, #tpu.memory_space<vmem>>, %arg5: memref<1x128xf32, #tpu.memory_space<vmem>>, %arg6: memref<12x128xf32, #tpu.memory_space<vmem>>, %arg7: memref<12x128xf32, #tpu.memory_space<vmem>>) attributes {dimension_semantics = [#tpu.dimension_semantics<parallel>], iteration_bounds = array<i64: 1>, scalar_prefetch = 0 : i64, scratch_operands = 2 : i64, tpu.core_type = #tpu.core_type<tc>, window_params = [{transform_indices = @transform_0, window_bounds = array<i64: 4, 128>}, {transform_indices = @transform_1, window_bounds = array<i64: 12, 128>}, {transform_indices = @transform_2, window_bounds = array<i64: 30, 128>}, {transform_indices = @transform_3, window_bounds = array<i64: 3, 128>}, {transform_indices = @transform_4, window_bounds = array<i64: 1, 128>}]} {
    %c0 = arith.constant 0 : index
    %c0_0 = arith.constant 0 : index
    %0 = vector.load %arg2[%c0, %c0_0] : memref<12x128xf32, #tpu.memory_space<vmem>>, vector<3x128xf32>
    %c0_1 = arith.constant 0 : index
    %c0_2 = arith.constant 0 : index
    %1 = vector.load %arg1[%c0_1, %c0_2] : memref<4x128xf32, #tpu.memory_space<vmem>>, vector<1x128xf32>
    %2 = vector.broadcast %1 : vector<1x128xf32> to vector<3x128xf32>
    %3 = arith.subf %0, %2 : vector<3x128xf32>
    %c0_3 = arith.constant 0 : index
    %c0_4 = arith.constant 0 : index
    %4 = vector.load %arg6[%c0_3, %c0_4] : memref<12x128xf32, #tpu.memory_space<vmem>>, vector<3x128xf32>
    tpu.vector_store %arg6[%c0_3, %c0_4], %3 {strides = array<i32>} : memref<12x128xf32, #tpu.memory_space<vmem>>, vector<3x128xf32>,
    %c3 = arith.constant 3 : index
    %c0_5 = arith.constant 0 : index
    %5 = vector.load %arg2[%c3, %c0_5] : memref<12x128xf32, #tpu.memory_space<vmem>>, vector<3x128xf32>
    %c1 = arith.constant 1 : index
    %c0_6 = arith.constant 0 : index
    %6 = vector.load %arg1[%c1, %c0_6] : memref<4x128xf32, #tpu.memory_space<vmem>>, vector<1x128xf32>
    %7 = vector.broadcast %6 : vector<1x128xf32> to vector<3x128xf32>
    %8 = arith.subf %5, %7 : vector<3x128xf32>
    %c3_7 = arith.constant 3 : index
    %c0_8 = arith.constant 0 : index
    %9 = vector.load %arg6[%c3_7, %c0_8] : memref<12x128xf32, #tpu.memory_space<vmem>>, vector<3x128xf32>
    tpu.vector_store %arg6[%c3_7, %c0_8], %8 {strides = array<i32>} : memref<12x128xf32, #tpu.memory_space<vmem>>, vector<3x128xf32>,
    %c6 = arith.constant 6 : index
    %c0_9 = arith.constant 0 : index
    %10 = vector.load %arg2[%c6, %c0_9] : memref<12x128xf32, #tpu.memory_space<vmem>>, vector<3x128xf32>
    %c2 = arith.constant 2 : index
    %c0_10 = arith.constant 0 : index
    %11 = vector.load %arg1[%c2, %c0_10] : memref<4x128xf32, #tpu.memory_space<vmem>>, vector<1x128xf32>
    %12 = vector.broadcast %11 : vector<1x128xf32> to vector<3x128xf32>
    %13 = arith.subf %10, %12 : vector<3x128xf32>
    %c6_11 = arith.constant 6 : index
    %c0_12 = arith.constant 0 : index
    %14 = vector.load %arg6[%c6_11, %c0_12] : memref<12x128xf32, #tpu.memory_space<vmem>>, vector<3x128xf32>
    tpu.vector_store %arg6[%c6_11, %c0_12], %13 {strides = array<i32>} : memref<12x128xf32, #tpu.memory_space<vmem>>, vector<3x128xf32>,
    %c9 = arith.constant 9 : index
    %c0_13 = arith.constant 0 : index
    %15 = vector.load %arg2[%c9, %c0_13] : memref<12x128xf32, #tpu.memory_space<vmem>>, vector<3x128xf32>
    %c3_14 = arith.constant 3 : index
    %c0_15 = arith.constant 0 : index
    %16 = vector.load %arg1[%c3_14, %c0_15] : memref<4x128xf32, #tpu.memory_space<vmem>>, vector<1x128xf32>
    %17 = vector.broadcast %16 : vector<1x128xf32> to vector<3x128xf32>
    %18 = arith.subf %15, %17 : vector<3x128xf32>
    %c9_16 = arith.constant 9 : index
    %c0_17 = arith.constant 0 : index
    %19 = vector.load %arg6[%c9_16, %c0_17] : memref<12x128xf32, #tpu.memory_space<vmem>>, vector<3x128xf32>
    tpu.vector_store %arg6[%c9_16, %c0_17], %18 {strides = array<i32>} : memref<12x128xf32, #tpu.memory_space<vmem>>, vector<3x128xf32>,
    %c0_18 = arith.constant 0 : index
    %c0_19 = arith.constant 0 : index
    %20 = vector.load %arg3[%c0_18, %c0_19] : memref<30x128xf32, #tpu.memory_space<vmem>>, vector<12x128xf32>
    %21 = math.exp %20 : vector<12x128xf32>
    %c0_20 = arith.constant 0 : index
    %c0_21 = arith.constant 0 : index
    %22 = vector.load %arg6[%c0_20, %c0_21] : memref<12x128xf32, #tpu.memory_space<vmem>>, vector<12x128xf32>
    %23 = arith.mulf %21, %22 : vector<12x128xf32>
    %c0_22 = arith.constant 0 : index
    %c0_23 = arith.constant 0 : index
    %24 = vector.load %arg7[%c0_22, %c0_23] : memref<12x128xf32, #tpu.memory_space<vmem>>, vector<12x128xf32>
    tpu.vector_store %arg7[%c0_22, %c0_23], %23 {strides = array<i32>} : memref<12x128xf32, #tpu.memory_space<vmem>>, vector<12x128xf32>,
    %c0_24 = arith.constant 0 : index
    %c0_25 = arith.constant 0 : index
    %25 = vector.load %arg7[%c0_24, %c0_25] : memref<12x128xf32, #tpu.memory_space<vmem>>, vector<9x128xf32>
    %c12 = arith.constant 12 : index
    %c0_26 = arith.constant 0 : index
    %26 = vector.load %arg3[%c12, %c0_26] : memref<30x128xf32, #tpu.memory_space<vmem>>, vector<9x128xf32>
    %c3_27 = arith.constant 3 : index
    %c0_28 = arith.constant 0 : index
    %27 = vector.load %arg6[%c3_27, %c0_28] : memref<12x128xf32, #tpu.memory_space<vmem>>, vector<9x128xf32>
    %28 = arith.mulf %26, %27 : vector<9x128xf32>
    %29 = arith.addf %25, %28 : vector<9x128xf32>
    %c0_29 = arith.constant 0 : index
    %c0_30 = arith.constant 0 : index
    %30 = vector.load %arg7[%c0_29, %c0_30] : memref<12x128xf32, #tpu.memory_space<vmem>>, vector<9x128xf32>
    tpu.vector_store %arg7[%c0_29, %c0_30], %29 {strides = array<i32>} : memref<12x128xf32, #tpu.memory_space<vmem>>, vector<9x128xf32>,
    %c0_31 = arith.constant 0 : index
    %c0_32 = arith.constant 0 : index
    %31 = vector.load %arg7[%c0_31, %c0_32] : memref<12x128xf32, #tpu.memory_space<vmem>>, vector<6x128xf32>
    %c21 = arith.constant 21 : index
    %c0_33 = arith.constant 0 : index
    %32 = vector.load %arg3[%c21, %c0_33] : memref<30x128xf32, #tpu.memory_space<vmem>>, vector<6x128xf32>
    %c6_34 = arith.constant 6 : index
    %c0_35 = arith.constant 0 : index
    %33 = vector.load %arg6[%c6_34, %c0_35] : memref<12x128xf32, #tpu.memory_space<vmem>>, vector<6x128xf32>
    %34 = arith.mulf %32, %33 : vector<6x128xf32>
    %35 = arith.addf %31, %34 : vector<6x128xf32>
    %c0_36 = arith.constant 0 : index
    %c0_37 = arith.constant 0 : index
    %36 = vector.load %arg7[%c0_36, %c0_37] : memref<12x128xf32, #tpu.memory_space<vmem>>, vector<6x128xf32>
    tpu.vector_store %arg7[%c0_36, %c0_37], %35 {strides = array<i32>} : memref<12x128xf32, #tpu.memory_space<vmem>>, vector<6x128xf32>,
    %c0_38 = arith.constant 0 : index
    %c0_39 = arith.constant 0 : index
    %37 = vector.load %arg7[%c0_38, %c0_39] : memref<12x128xf32, #tpu.memory_space<vmem>>, vector<3x128xf32>
    %c27 = arith.constant 27 : index
    %c0_40 = arith.constant 0 : index
    %38 = vector.load %arg3[%c27, %c0_40] : memref<30x128xf32, #tpu.memory_space<vmem>>, vector<3x128xf32>
    %c9_41 = arith.constant 9 : index
    %c0_42 = arith.constant 0 : index
    %39 = vector.load %arg6[%c9_41, %c0_42] : memref<12x128xf32, #tpu.memory_space<vmem>>, vector<3x128xf32>
    %40 = arith.mulf %38, %39 : vector<3x128xf32>
    %41 = arith.addf %37, %40 : vector<3x128xf32>
    %c0_43 = arith.constant 0 : index
    %c0_44 = arith.constant 0 : index
    %42 = vector.load %arg7[%c0_43, %c0_44] : memref<12x128xf32, #tpu.memory_space<vmem>>, vector<3x128xf32>
    tpu.vector_store %arg7[%c0_43, %c0_44], %41 {strides = array<i32>} : memref<12x128xf32, #tpu.memory_space<vmem>>, vector<3x128xf32>,
    %c0_45 = arith.constant 0 : index
    %c0_46 = arith.constant 0 : index
    %43 = vector.load %arg7[%c0_45, %c0_46] : memref<12x128xf32, #tpu.memory_space<vmem>>, vector<12x128xf32>
    %44 = arith.mulf %43, %43 : vector<12x128xf32>
    %cst = arith.constant 5.000000e-01 : f32
    %45 = vector.broadcast %cst : f32 to vector<12x128xf32>
    %46 = arith.mulf %45, %44 : vector<12x128xf32>
    %47 = arith.subf %46, %20 : vector<12x128xf32>
    %c0_47 = arith.constant 0 : index
    %c0_48 = arith.constant 0 : index
    %48 = vector.load %arg4[%c0_47, %c0_48] : memref<3x128xf32, #tpu.memory_space<vmem>>, vector<3x128xf32>
    %49 = tpu.concatenate %48, %48, %48, %48 in 0 : vector<3x128xf32>, vector<3x128xf32>, vector<3x128xf32>, vector<3x128xf32> -> vector<12x128xf32>
    %50 = arith.mulf %49, %47 : vector<12x128xf32>
    %cst_49 = arith.constant dense<0.000000e+00> : vector<128xf32>
    %51 = vector.multi_reduction <add>, %50, %cst_49 [0] : vector<12x128xf32> to vector<128xf32>
    %52 = vector.shape_cast %51 : vector<128xf32> to vector<1x128xf32>
    %cst_50 = arith.constant dense<0.000000e+00> : vector<128xf32>
    %53 = vector.multi_reduction <add>, %48, %cst_50 [0] : vector<3x128xf32> to vector<128xf32>
    %54 = vector.shape_cast %53 : vector<128xf32> to vector<1x128xf32>
    %cst_51 = arith.constant 3.67575407 : f32
    %55 = vector.broadcast %cst_51 : f32 to vector<1x128xf32>
    %56 = arith.mulf %55, %54 : vector<1x128xf32>
    %57 = arith.addf %52, %56 : vector<1x128xf32>
    %c0_52 = arith.constant 0 : index
    %c0_53 = arith.constant 0 : index
    %58 = vector.load %arg5[%c0_52, %c0_53] : memref<1x128xf32, #tpu.memory_space<vmem>>, vector<1x128xf32>
    tpu.vector_store %arg5[%c0_52, %c0_53], %57 {strides = array<i32>} : memref<1x128xf32, #tpu.memory_space<vmem>>, vector<1x128xf32>,
    return
  }
  func.func @transform_0(%arg0: i32) -> (i32, i32) {
    %c0_i32 = arith.constant 0 : i32
    %c0_i32_0 = arith.constant 0 : i32
    return %c0_i32, %arg0 : i32, i32
  }
  func.func @transform_1(%arg0: i32) -> (i32, i32) {
    %c0_i32 = arith.constant 0 : i32
    %c0_i32_0 = arith.constant 0 : i32
    return %c0_i32, %arg0 : i32, i32
  }
  func.func @transform_2(%arg0: i32) -> (i32, i32) {
    %c0_i32 = arith.constant 0 : i32
    %c0_i32_0 = arith.constant 0 : i32
    return %c0_i32, %arg0 : i32, i32
  }
  func.func @transform_3(%arg0: i32) -> (i32, i32) {
    %c0_i32 = arith.constant 0 : i32
    %c0_i32_0 = arith.constant 0 : i32
    return %c0_i32, %arg0 : i32, i32
  }
  func.func @transform_4(%arg0: i32) -> (i32, i32) {
    %c0_i32 = arith.constant 0 : i32
    %c0_i32_0 = arith.constant 0 : i32
    return %c0_i32, %arg0 : i32, i32
  }
}

</mosaic_0001>

<bundles_post_ra>
// kernel: tpu_custom_call.1
= control target key start
LH: loop header
LB: loop body
LE: loop exit
PB: predicated region body
PF: predicated region fallthrough
CT: control target
= control target key end

     0   :  { %9 = vsyncpa [#allocation5], 0  ;;  %s384_s0 = inlined_call_operand.hbm [shape: f32[4,128], index: 0, kind: input, shape index: {}]   ;;  %s385_s1 = inlined_call_operand.hbm [shape: f32[12,128], index: 1, kind: input, shape index: {}]   ;;  %s386_s2 = inlined_call_operand.hbm [shape: f32[30,128], index: 2, kind: input, shape index: {}]   ;;  %s387_s3 = inlined_call_operand.vmem [shape: f32[3,128], index: 3, kind: input, shape index: {}]   ;;  %s388_s4 = inlined_call_operand.hbm [shape: f32[1,128], index: 4, kind: output, shape index: {}]  }
   0x1   :  { %10 = vsyncpa [#allocation8], 0 }
   0x2   :  { %11 = vsyncpa [#allocation6], 0  ;;  %s292_s15 = smov [#allocation7]   ;;  %s198_s19 = scalar_lea.hbm %s385_s1, 256 }
   0x3   :  { %s27_s16 = sshll.u32 %s292_s15, 4  ;;  %p199_p0 = scmp.ne.s32.totalorder %s385_s1, %s198_s19  ;;  %s28_s16 = int_to_ptr.vmem [resolvable:$true] %s27_s16 }
   0x4   :  { %p202_p1 = scmp.lt.u32.totalorder %s198_s19, %s385_s1 }
   0x6   :  { %p204_p2 = pnand %p202_p1, %p199_p0 }
   0x8   :  { %207 = shalt.err (!%p204_p2)
}
   0x9   :  { %s208_s24 = scalar_lea.vmem %s28_s16, 256  ;;  %p213_p4 = scmp.lt.s32.totalorder %s28_s16, %s28_s16 }
   0xa   :  { %p209_p3 = scmp.ne.s32.totalorder %s28_s16, %s208_s24  ;;  %p214_p5 = scmp.lt.s32.totalorder %s208_s24, %s208_s24 }
   0xc   :  { %p215_p6 = por %p214_p5, %p213_p4 }
   0xe   :  { %p216_p7 = pnand %p215_p6, %p209_p3 }
  0x10   :  { %219 = shalt.err (!%p216_p7)
}
  0x11   :  { %s293_s25 = smov 128   ;;  %s294_s26 = smov 8  }
  0x12   :  { %33 = dma.hbm_to_vmem [thread:$0]  %s385_s1, 256, %s28_s16, [#allocation8], %s293_s25, %s293_s25, %s294_s26  }
  0x13   :  { %s295_s29 = smov [#allocation4]   ;;  %s296_s5 = smov [#allocation9]  }
  0x14   :  { %s18_s30 = sshll.u32 %s295_s29, 4  ;;  %s39_s6 = sshll.u32 %s296_s5, 4  ;;  %s19_s30 = int_to_ptr.vmem [resolvable:$true] %s18_s30  ;;  %s40_s6 = int_to_ptr.vmem [resolvable:$true] %s39_s6 }
  0x15   :  { %s220_s9 = scalar_lea.hbm %s384_s0, 64 }
  0x16   :  { %p221_p8 = scmp.ne.s32.totalorder %s384_s0, %s220_s9  ;;  %p224_p9 = scmp.lt.u32.totalorder %s220_s9, %s384_s0 }
  0x18   :  { %p226_p10 = pnand %p224_p9, %p221_p8 }
  0x1a   :  { %229 = shalt.err (!%p226_p10)
}
  0x1b   :  { %s230_s1 = scalar_lea.vmem %s19_s30, 64  ;;  %p235_p12 = scmp.lt.s32.totalorder %s19_s30, %s19_s30 }
  0x1c   :  { %p231_p11 = scmp.ne.s32.totalorder %s19_s30, %s230_s1  ;;  %p236_p13 = scmp.lt.s32.totalorder %s230_s1, %s230_s1 }
  0x1e   :  { %p237_p0 = por %p236_p13, %p235_p12 }
  0x20   :  { %p238_p1 = pnand %p237_p0, %p231_p11 }
  0x22   :  { %241 = shalt.err (!%p238_p1)
}
  0x23   :  { %21 = dma.hbm_to_vmem [thread:$0]  %s384_s0, 64, %s19_s30, [#allocation5]  }
  0x24   :  { %s242_s18 = scalar_lea.hbm %s386_s2, 512 }
  0x25   :  { %p243_p2 = scmp.ne.s32.totalorder %s386_s2, %s242_s18  ;;  %p246_p3 = scmp.lt.u32.totalorder %s242_s18, %s386_s2 }
  0x27   :  { %p248_p4 = pnand %p246_p3, %p243_p2 }
  0x29   :  { %251 = shalt.err (!%p248_p4)
}
  0x2a   :  { %s252_s23 = scalar_lea.vmem %s40_s6, 512  ;;  %p257_p6 = scmp.lt.s32.totalorder %s40_s6, %s40_s6 }
  0x2b   :  { %p253_p5 = scmp.ne.s32.totalorder %s40_s6, %s252_s23  ;;  %p258_p7 = scmp.lt.s32.totalorder %s252_s23, %s252_s23 }
  0x2d   :  { %p259_p8 = por %p258_p7, %p257_p6 }
  0x2f   :  { %p260_p9 = pnand %p259_p8, %p253_p5 }
  0x31   :  { %263 = shalt.err (!%p260_p9)
}
  0x32   :  { %45 = dma.hbm_to_vmem [thread:$0]  %s386_s2, 512, %s40_s6, [#allocation8], %s293_s25, %s293_s25, %s294_s26  }
  0x33   :  { %286 = dma.done.wait [#allocation5], 64  }
  0x34   :  { %287 = vsyncadd [#allocation5], 4294967232 }
  0x35   :  { %288 = dma.done.wait [#allocation8], 768  }
  0x36   :  { %289 = vsyncadd [#allocation8], 4294966528  ;;  %v57_v0 = vld [vmem:[#allocation7] sm:$0x7]  ;;  %v184_v1 = vld [vmem:[#allocation4] ss:$0 sm:$0xff] }
  0x37   :  { %v65_v2 = vld [vmem:[#allocation7 + $0x3] sm:$0x7]  ;;  %v63_v3 = vsub.f32 %v57_v0, %v184_v1  ;;  %v185_v4 = vld [vmem:[#allocation4 + $0x1] ss:$0 sm:$0xff]  ;;  %v73_v5 = vld [vmem:[#allocation7 + $0x6] sm:$0x7] }
  0x38   :  { %v186_v6 = vld [vmem:[#allocation4 + $0x2] ss:$0 sm:$0xff]  ;;  %v71_v7 = vsub.f32 %v65_v2, %v185_v4  ;;  %v81_v9 = vld [vmem:[#allocation7 + $0x9] sm:$0x7]  ;;  %v187_v10 = vld [vmem:[#allocation4 + $0x3] ss:$0 sm:$0xff] }
  0x39   :  { %v79_v8 = vsub.f32 %v73_v5, %v186_v6  ;;  %v365_v11 = vld [vmem:[#allocation9] sm:$0xff]  ;;  %64 = vst [vmem:[#allocation2] sm:$0x7] %v63_v3  ;;  %v87_v12 = vsub.f32 %v81_v9, %v187_v10  ;;  %v90_v14 = vld [vmem:[#allocation9 + $0x8] sm:$0xf]  ;;  %v103_v16 = vld [vmem:[#allocation9 + $0xc] sm:$0xff] }
  0x3a   :  { %v91_v13 = vmul.f32 1.442695, %v365_v11  ;;  %72 = vst [vmem:[#allocation2 + $0x3] sm:$0x7] %v71_v7  ;;  %v93_v15 = vmul.f32 1.442695, %v90_v14 }
  0x3b   :  { %80 = vst [vmem:[#allocation2 + $0x6] sm:$0x7] %v79_v8  ;;  %88 = vst [vmem:[#allocation2 + $0x9] sm:$0x7] %v87_v12  ;;  %v104_v26 = vld [vmem:[#allocation9 + $0x14] sm:$0x1] }
  0x3c   :  { %194 = vpow2.f32 %v91_v13  ;;  %v114_v28 = vld [vmem:[#allocation9 + $0x15] sm:$0x3f]  ;;  %v120_v36 = vld [vmem:[#allocation9 + $0x1b] sm:$0x7]  ;;  %v133_v42 = vld [vmem:[%s387_s3] sm:$0x7] }
  0x3d   :  { %196 = vpow2.f32 %v93_v15  ;;  %vm141_vm0 = vcmask 1042432   ;;  %v135_v47 = vrot.slane %v133_v42, 5  ;;  %v137_v48 = vrot.slane %v133_v42, 2  ;;  %s297_s3 = smov [#allocation10]  }
  0x3e   :  { %v158_v44 = vsel %vm141_vm0, %v133_v42, 0.0  ;;  %v139_v49 = vrot.slane %v133_v42, 7  ;;  %vm145_vm1 = vcmask 1040384   ;;  %vm143_vm2 = vcmask 1045504   ;;  %s174_s26 = sshll.u32 %s297_s3, 4  ;;  %s175_s26 = int_to_ptr.vmem [resolvable:$true] %s174_s26 }
  0x3f   :  { %v159_v45 = vrot.slane %v158_v44, 4  ;;  %v142_v54 = vsel %vm141_vm0, %v133_v42, %v135_v47  ;;  %vm149_vm3 = vcmask 1043456   ;;  %s264_s27 = scalar_lea.vmem %s175_s26, 16  ;;  %s268_s28 = scalar_lea.vmem %s175_s26, 32 }
  0x40   :  { %v146_v55 = vsel %vm145_vm1, %v137_v48, %v139_v49  ;;  %v144_v58 = vsel %vm143_vm2, %v142_v54, %v137_v48  ;;  %p265_p10 = scmp.ne.s32.totalorder %s175_s26, %s264_s27  ;;  %p269_p11 = scmp.lt.s32.totalorder %s175_s26, %s175_s26 }
  0x41   :  { %v160_v50 = vadd.f32 %v159_v45, %v158_v44  ;;  %p270_p12 = scmp.lt.s32.totalorder %s268_s28, %s264_s27 }
  0x42   :  { %v105_v17 = vld [vmem:[#allocation2 + $0x3] sm:$0xff]  ;;  %v106_v27 = vld [vmem:[#allocation2 + $0xb] sm:$0x1] }
  0x43   :  { %v95_v18 = vld [vmem:[#allocation2] sm:$0xff]  ;;  %v96_v19 = vld [vmem:[#allocation2 + $0x8] sm:$0xf]  ;;  %v107_v20 = vmul.f32 %v105_v17, %v103_v16  ;;  %v108_v30 = vmul.f32 %v106_v27, %v104_v26  ;;  %v161_v57 = vrot.slane %v160_v50, 2  ;;  %p271_p13 = por %p270_p12, %p269_p11 }
  0x44   :  { %v115_v29 = vld [vmem:[#allocation2 + $0x6] sm:$0x3f] }
  0x45   :  { %v116_v32 = vmul.f32 %v115_v29, %v114_v28  ;;  %v121_v37 = vld [vmem:[#allocation2 + $0x9] sm:$0x7]  ;;  %v162_v62 = vadd.f32 %v161_v57, %v160_v50  ;;  %p272_p0 = pnand %p271_p13, %p265_p10 }
  0x46   :  { %v195_v21 = vpop.eup %194  ;;  %v122_v38 = vmul.f32 %v121_v37, %v120_v36 }
  0x47   :  { %v197_v22 = vpop.eup %196  ;;  %v97_v23 = vmul.f32 %v195_v21, %v95_v18  ;;  %v163_v2 = vrot.slane %v162_v62, 1 }
  0x48   :  { %v98_v24 = vmul.f32 %v197_v22, %v96_v19 }
  0x49   :  { %v109_v25 = vadd.f32 %v107_v20, %v97_v23  ;;  %v164_v5 = vadd.f32 %v163_v2, %v162_v62 }
  0x4a   :  { %100 = vst [vmem:[#allocation3 + $0x8] sm:$0xf] %v98_v24 }
  0x4b   :  { %111 = vst [vmem:[#allocation3] sm:$0xff] %v109_v25  ;;  %v165_v8 = vmul.f32 3.675754, %v164_v5 }
  0x51   :  { %v102_v31 = vld [vmem:[#allocation3 + $0x8] sm:$0x1] }
  0x52   :  { %v110_v33 = vadd.f32 %v108_v30, %v102_v31  ;;  %v113_v34 = vld [vmem:[#allocation3] sm:$0x3f] }
  0x53   :  { %v117_v35 = vadd.f32 %v116_v32, %v113_v34 }
  0x54   :  { %112 = vst [vmem:[#allocation3 + $0x8] sm:$0x1] %v110_v33 }
  0x55   :  { %118 = vst [vmem:[#allocation3] sm:$0x3f] %v117_v35 }
  0x5b   :  { %v126_v39 = vld [vmem:[#allocation3 + $0x8] sm:$0xf] }
  0x5c   :  { %v119_v40 = vld [vmem:[#allocation3] sm:$0x7]  ;;  %v128_v43 = vmul.f32 %v126_v39, %v126_v39 }
  0x5d   :  { %v123_v41 = vadd.f32 %v122_v38, %v119_v40 }
  0x5e   :  { %v130_v46 = vmul.f32 0.5, %v128_v43 }
  0x5f   :  { %124 = vst [vmem:[#allocation3] sm:$0x7] %v123_v41 }
  0x60   :  { %v132_v52 = vsub.f32 %v130_v46, %v90_v14 }
  0x62   :  { %v148_v59 = vmul.f32 %v146_v55, %v132_v52 }
  0x64   :  { %v150_v63 = vsel %vm149_vm3, %v148_v59, 0.0 }
  0x66   :  { %v125_v51 = vld [vmem:[#allocation3] sm:$0xff] }
  0x67   :  { %v127_v53 = vmul.f32 %v125_v51, %v125_v51 }
  0x69   :  { %v129_v56 = vmul.f32 0.5, %v127_v53 }
  0x6b   :  { %v131_v60 = vsub.f32 %v129_v56, %v365_v11 }
  0x6d   :  { %v147_v61 = vmul.f32 %v144_v58, %v131_v60 }
  0x6f   :  { %v151_v0 = vadd.f32 %v150_v63, %v147_v61 }
  0x71   :  { %v152_v1 = vrot.slane %v151_v0, 4 }
  0x73   :  { %v153_v3 = vadd.f32 %v152_v1, %v151_v0 }
  0x75   :  { %v154_v4 = vrot.slane %v153_v3, 2 }
  0x77   :  { %v155_v6 = vadd.f32 %v154_v4, %v153_v3 }
  0x79   :  { %v156_v7 = vrot.slane %v155_v6, 1 }
  0x7b   :  { %v157_v9 = vadd.f32 %v156_v7, %v155_v6 }
  0x7d   :  { %v166_v10 = vadd.f32 %v165_v8, %v157_v9 }
  0x7f   :  { %167 = vst [vmem:[#allocation10] sm:$0x1] %v166_v10 }
  0x80   :  { %275 = shalt.err (!%p272_p0)
}
  0x81   :  { %s276_s5 = scalar_lea.hbm %s388_s4, 16 }
  0x82   :  { %p277_p1 = scmp.ne.s32.totalorder %s388_s4, %s276_s5  ;;  %p280_p2 = scmp.lt.u32.totalorder %s276_s5, %s388_s4 }
  0x84   :  { %p282_p3 = pnand %p280_p2, %p277_p1 }
  0x86   :  { %285 = shalt.err (!%p282_p3)
}
  0x87   :  { %177 = dma.vmem_to_hbm [thread:$0]  %s175_s26, 16, %s388_s4, [#allocation6]  }
  0x88   :  { %290 = dma.done.wait [#allocation6], 16  }
  0x89   :  { %291 = vsyncadd [#allocation6], 4294967280 }
  0x8a   :  { %181 = vsyncpa [#allocation5], 1 }
  0x8b   :  { %182 = vsyncpa [#allocation8], 1 }
  0x8c   :  { %183 = vsyncpa [#allocation6], 1 }

</bundles_post_ra>
